<compile_context>
chip_gen: v7x
topology: tpu7x:2x2x1
jax: 0.10.0
libtpu: 0.0.40
codegen_flags: <defaults>
</compile_context>

<pallas_src>
import functools

import jax
import jax.numpy as jnp
from jax.experimental import pallas as pl
from jax.experimental.pallas import tpu as pltpu

BN_EPS = 1e-5
LANE = 128


def _round_up(n, m):
    return ((n + m - 1) // m) * m


# ----------------------------------------------------------------------------
# Kernel: attention gate + 3x (Linear -> ReLU) [BN pre-folded] + final Linear
# ----------------------------------------------------------------------------
def _fsnn_kernel(
    x_ref,
    aw1_ref, ab1_ref, aw2_ref, ab2_ref,
    w0_ref, b0_ref, w1_ref, b1_ref, w2_ref, b2_ref,
    wo_ref, bo_ref,
    *out_refs,
    feat_dim, pack,
):
    cdt = w0_ref.dtype            # MXU operand dtype (bf16 fast path or f32)
    x = x_ref[...]                # already cdt: no f32 round-trip

    def mm(h, w_ref, b_ref):
        # MXU matmul with f32 accumulation; bias add in f32.
        return (jnp.dot(h, w_ref[...], preferred_element_type=jnp.float32)
                + b_ref[...].astype(jnp.float32))

    # ---- attention branch: Linear -> ReLU -> Linear -> Sigmoid (padded to 128 lanes)
    a_h = jnp.maximum(mm(x, aw1_ref, ab1_ref), 0.0).astype(cdt)
    attn = jax.nn.sigmoid(mm(a_h, aw2_ref, ab2_ref))          # f32, EUP exp/recip

    # zero the padded attention lanes (sigmoid(0) = 0.5 must never leak)
    lane = jax.lax.broadcasted_iota(jnp.int32, attn.shape, 1)
    attn_m = jnp.where(lane < feat_dim, attn, 0.0)

    # gate the real features
    x_att = x * attn_m[:, :feat_dim].astype(cdt)

    # ---- main network: eval BatchNorm already folded into the next Linear
    h = jnp.maximum(mm(x_att, w0_ref, b0_ref), 0.0).astype(cdt)
    h = jnp.maximum(mm(h, w1_ref, b1_ref), 0.0).astype(cdt)
    h = jnp.maximum(mm(h, w2_ref, b2_ref), 0.0).astype(cdt)
    out = mm(h, wo_ref, bo_ref)                                # f32

    if pack:
        # wo/bo were column-offset-padded so `out` is nonzero only in lanes
        # [feat_dim, feat_dim+out_dim); attn_m only in lanes [0, feat_dim).
        slab_ref, = out_refs
        slab_ref[...] = (attn_m + out).astype(slab_ref.dtype)  # single lane-dense store
    else:
        out_ref, attn_ref = out_refs
        out_ref[...] = out.astype(out_ref.dtype)
        attn_ref[...] = attn_m.astype(attn_ref.dtype)


# ----------------------------------------------------------------------------
# Parameter preparation: BN folding (f32) + zero padding to lane-aligned widths
# ----------------------------------------------------------------------------
def _prepare_params(params, input_dim, output_dim, hidden_dims, *, pack):
    hp = jax.lax.Precision.HIGHEST

    def pad2(a, rows, cols, col_off=0):
        return jnp.pad(a, ((0, rows - a.shape[0]),
                           (col_off, cols - col_off - a.shape[1])))

    attn_hidden = params["aw1"].shape[1]
    ah_pad = _round_up(max(attn_hidden, 1), LANE)
    f_pad = _round_up(input_dim, LANE)
    out_pad = _round_up(output_dim, LANE)
    slab_w = f_pad if pack else out_pad          # width of the final-Linear output

    # Attention branch: pad hidden and output widths with zeros.
    aw1 = pad2(params["aw1"], input_dim, ah_pad)
    ab1 = pad2(params["ab1"], 1, ah_pad)
    aw2 = pad2(params["aw2"], ah_pad, f_pad)
    ab2 = pad2(params["ab2"], 1, f_pad)

    # This module applies BN AFTER ReLU (Linear -> ReLU -> BN -> Dropout), so
    # eval BN is an affine on the ReLU output and folds into the NEXT Linear:
    #   BN(y) = y*s + t,  s = g*rsqrt(v+eps), t = be - m*s
    #   BN(y) @ W + b = y @ (s[:,None]*W) + (t@W + b)
    n = len(hidden_dims)
    folded_w, folded_b = [], []
    w_cur, b_cur = params["w0"], params["b0"]
    for i in range(n):
        s = params[f"g{i}"] * jax.lax.rsqrt(params[f"v{i}"] + BN_EPS)   # (1, hd_i)
        t = params[f"be{i}"] - params[f"m{i}"] * s                      # (1, hd_i)
        folded_w.append(w_cur)
        folded_b.append(b_cur)
        if i + 1 < n:
            w_next, b_next = params[f"w{i + 1}"], params[f"b{i + 1}"]
        else:
            w_next, b_next = params["wo"], params["bo"]
        w_cur = s.reshape(-1, 1) * w_next
        b_cur = jnp.dot(t, w_next, precision=hp) + b_next
    wo_f, bo_f = w_cur, b_cur

    # Zero-pad hidden widths to lane multiples (zeros through ReLU stay zero,
    # and the padded rows of the following weight matrix are zero).
    hd_pad = [_round_up(h, LANE) for h in hidden_dims]
    in_dims = [input_dim] + hd_pad[:-1]
    main = []
    for i in range(n):
        main.append(pad2(folded_w[i], in_dims[i], hd_pad[i]))
        main.append(pad2(folded_b[i], 1, hd_pad[i]))

    # In pack mode, offset the final Linear's columns by input_dim so its output
    # lands in lanes [F, F+out_dim) of the packed slab (attn occupies [0, F)).
    col_off = input_dim if pack else 0
    wo_p = pad2(wo_f, hd_pad[-1], slab_w, col_off=col_off)
    bo_p = pad2(bo_f, 1, slab_w, col_off=col_off)

    return [aw1, ab1, aw2, ab2] + main + [wo_p, bo_p]


# ----------------------------------------------------------------------------
# Wrapper
# ----------------------------------------------------------------------------
@functools.partial(jax.jit, static_argnames=("hidden_dims", "block_b", "use_bf16",
                                             "vmem_limit_mb", "out_dtype"))
def feature_selection_nn(x, params, *, hidden_dims=(256, 128, 64),
                         block_b=1024, use_bf16=True, vmem_limit_mb=32,
                         out_dtype=None):
    B, F = x.shape
    output_dim = params["wo"].shape[1]
    f_pad = _round_up(F, LANE)
    out_pad = _round_up(output_dim, LANE)
    pack = (F + output_dim) <= LANE
    out_dtype = x.dtype if out_dtype is None else jnp.dtype(out_dtype)

    # BN fold stays in f32; cast to the MXU operand dtype afterwards.
    kparams = _prepare_params(params, F, output_dim, hidden_dims, pack=pack)
    cdt = jnp.bfloat16 if use_bf16 else x.dtype
    kparams = [p.astype(cdt) for p in kparams]
    x_k = x.astype(cdt)

    # Batch tile: sublane multiple (16 for bf16, 8 for f32), capped so the grid
    # has >= 2 steps whenever B allows it (both v7x TensorCores), capped by
    # block_b (keep <= 2048 at the default 32 MiB scoped VMEM on v7x).
    sub = 16 if cdt == jnp.bfloat16 else 8
    tb = min(_round_up(block_b, sub), max(_round_up(pl.cdiv(B, 2), sub), sub))
    grid = (pl.cdiv(B, tb),)          # ragged last block handled by Pallas (no pad)

    x_spec = pl.BlockSpec((tb, F), lambda i: (i, 0))
    # Weights/biases: full-array blocks, constant block index -> DMA'd once and
    # kept VMEM-resident across all grid steps.
    param_specs = [pl.BlockSpec(p.shape, lambda i: (0, 0)) for p in kparams]

    # Cost estimate for XLA scheduling.
    itemsize = jnp.dtype(cdt).itemsize
    weight_idx = (0, 2, 4, 6, 8, 10)
    flops = 2 * B * sum(kparams[i].shape[0] * kparams[i].shape[1] for i in weight_idx)
    out_cols = LANE if pack else (out_pad + f_pad)
    bytes_accessed = (B * F * itemsize
                      + sum(p.size * itemsize for p in kparams)
                      + B * out_cols * jnp.dtype(out_dtype).itemsize)
    cost = pl.CostEstimate(flops=flops, transcendentals=B * f_pad,
                           bytes_accessed=bytes_accessed)

    cparams = pltpu.CompilerParams(
        dimension_semantics=("parallel",),            # 2 TCs on v7x; no-op on v5e/v6e
        vmem_limit_bytes=vmem_limit_mb * 1024 * 1024,  # raise for block_b > 2048
    )
    kernel = functools.partial(_fsnn_kernel, feat_dim=F, pack=pack)

    if pack:
        # Single lane-dense (B, 128) slab: attn in [0, F), out in [F, F+out_dim).
        slab = pl.pallas_call(
            kernel,
            out_shape=jax.ShapeDtypeStruct((B, LANE), out_dtype),
            grid=grid,
            in_specs=[x_spec] + param_specs,
            out_specs=pl.BlockSpec((tb, LANE), lambda i: (i, 0)),
            compiler_params=cparams,
            cost_estimate=cost,
        )(x_k, *kparams)
        return slab[:, F:F + output_dim], slab[:, :F]

    out_p, attn_p = pl.pallas_call(
        kernel,
        out_shape=(jax.ShapeDtypeStruct((B, out_pad), out_dtype),
                   jax.ShapeDtypeStruct((B, f_pad), out_dtype)),
        grid=grid,
        in_specs=[x_spec] + param_specs,
        out_specs=(pl.BlockSpec((tb, out_pad), lambda i: (i, 0)),
                   pl.BlockSpec((tb, f_pad), lambda i: (i, 0))),
        compiler_params=cparams,
        cost_estimate=cost,
    )(x_k, *kparams)
    return out_p[:, :output_dim], attn_p[:, :F]


# ----------------------------------------------------------------------------
# Deterministic synthetic parameters (shapes match the PyTorch module)
# ----------------------------------------------------------------------------
def make_params(key, input_dim, output_dim, hidden_dims=(256, 128, 64)):
    keys = iter(jax.random.split(key, 64))
    attn_hidden = max(input_dim // 4, 1)

    def lin(in_d, out_d):
        # stored as (in, out) so the kernel computes x @ W
        w = 0.1 * jax.random.normal(next(keys), (in_d, out_d), jnp.float32)
        b = 0.1 * jax.random.normal(next(keys), (1, out_d), jnp.float32)
        return w, b

    params = {}
    params["aw1"], params["ab1"] = lin(input_dim, attn_hidden)
    params["aw2"], params["ab2"] = lin(attn_hidden, input_dim)

    prev = input_dim
    for i, hd in enumerate(hidden_dims):
        params[f"w{i}"], params[f"b{i}"] = lin(prev, hd)
        params[f"g{i}"] = 1.0 + 0.05 * jax.random.normal(next(keys), (1, hd), jnp.float32)
        params[f"be{i}"] = 0.05 * jax.random.normal(next(keys), (1, hd), jnp.float32)
        params[f"m{i}"] = 0.05 * jax.random.normal(next(keys), (1, hd), jnp.float32)
        params[f"v{i}"] = 1.0 + 0.1 * jax.random.uniform(next(keys), (1, hd), jnp.float32)
        prev = hd
    params["wo"], params["bo"] = lin(prev, output_dim)
    return params


def _reference(x, params, hidden_dims=(256, 128, 64)):
    """Pure-JAX f32 reference with the original (unfolded, unpadded) parameters."""
    hp = jax.lax.Precision.HIGHEST

    def lin(h, w, b):
        return jnp.dot(h, w, precision=hp) + b

    a = jnp.maximum(lin(x, params["aw1"], params["ab1"]), 0.0)
    attn = jax.nn.sigmoid(lin(a, params["aw2"], params["ab2"]))
    h = x * attn
    for i in range(len(hidden_dims)):
        y = jnp.maximum(lin(h, params[f"w{i}"], params[f"b{i}"]), 0.0)
        h = (y - params[f"m{i}"]) * jax.lax.rsqrt(params[f"v{i}"] + BN_EPS) \
            * params[f"g{i}"] + params[f"be{i}"]
    out = lin(h, params["wo"], params["bo"])
    return out, attn


if __name__ == "__main__":
    B, INPUT_DIM, OUTPUT_DIM = 32, 32, 16

    key = jax.random.PRNGKey(0)
    kx, kp = jax.random.split(key)
    x = jax.random.normal(kx, (B, INPUT_DIM), jnp.float32)
    params = make_params(kp, INPUT_DIM, OUTPUT_DIM)

    ref_out, ref_attn = _reference(x, params)

    # f32 verification path (tight tolerances).
    out32, attn32 = jax.block_until_ready(
        feature_selection_nn(x, params, use_bf16=False))
    assert out32.shape == ref_out.shape and attn32.shape == ref_attn.shape
    assert jnp.allclose(out32, ref_out, atol=5e-3, rtol=5e-3)
    assert jnp.allclose(attn32, ref_attn, atol=1e-3, rtol=1e-3)

    # bf16 fast path (default): bf16 MXU operands, f32 accumulation.
    out16, attn16 = jax.block_until_ready(feature_selection_nn(x, params))
    assert out16.shape == ref_out.shape and attn16.shape == ref_attn.shape
    assert jnp.allclose(out16, ref_out, atol=5e-2, rtol=5e-2)
    assert jnp.allclose(attn16, ref_attn, atol=2e-2, rtol=2e-2)

    print("KERNEL_OK")
</pallas_src>

<mosaic_0001>
module attributes {stable_mosaic.version = 11 : i64} {
  func.func @_fsnn_kernel(%arg0: i32, %arg1: memref<16x32xf32, #tpu.memory_space<vmem>>, %arg2: memref<32x128xf32, #tpu.memory_space<vmem>>, %arg3: memref<1x128xf32, #tpu.memory_space<vmem>>, %arg4: memref<128x128xf32, #tpu.memory_space<vmem>>, %arg5: memref<1x128xf32, #tpu.memory_space<vmem>>, %arg6: memref<32x256xf32, #tpu.memory_space<vmem>>, %arg7: memref<1x256xf32, #tpu.memory_space<vmem>>, %arg8: memref<256x128xf32, #tpu.memory_space<vmem>>, %arg9: memref<1x128xf32, #tpu.memory_space<vmem>>, %arg10: memref<128x128xf32, #tpu.memory_space<vmem>>, %arg11: memref<1x128xf32, #tpu.memory_space<vmem>>, %arg12: memref<128x128xf32, #tpu.memory_space<vmem>>, %arg13: memref<1x128xf32, #tpu.memory_space<vmem>>, %arg14: memref<16x128xf32, #tpu.memory_space<vmem>>) attributes {dimension_semantics = [#tpu.dimension_semantics<parallel>], iteration_bounds = array<i64: 2>, scalar_prefetch = 0 : i64, scratch_operands = 0 : i64, tpu.core_type = #tpu.core_type<tc>, window_params = [{transform_indices = @transform_0, window_bounds = array<i64: 16, 32>}, {pipeline_mode = #tpu.pipeline_mode<synchronous>, transform_indices = @transform_1, window_bounds = array<i64: 32, 128>}, {pipeline_mode = #tpu.pipeline_mode<synchronous>, transform_indices = @transform_2, window_bounds = array<i64: 1, 128>}, {pipeline_mode = #tpu.pipeline_mode<synchronous>, transform_indices = @transform_3, window_bounds = array<i64: 128, 128>}, {pipeline_mode = #tpu.pipeline_mode<synchronous>, transform_indices = @transform_4, window_bounds = array<i64: 1, 128>}, {pipeline_mode = #tpu.pipeline_mode<synchronous>, transform_indices = @transform_5, window_bounds = array<i64: 32, 256>}, {pipeline_mode = #tpu.pipeline_mode<synchronous>, transform_indices = @transform_6, window_bounds = array<i64: 1, 256>}, {pipeline_mode = #tpu.pipeline_mode<synchronous>, transform_indices = @transform_7, window_bounds = array<i64: 256, 128>}, {pipeline_mode = #tpu.pipeline_mode<synchronous>, transform_indices = @transform_8, window_bounds = array<i64: 1, 128>}, {pipeline_mode = #tpu.pipeline_mode<synchronous>, transform_indices = @transform_9, window_bounds = array<i64: 128, 128>}, {pipeline_mode = #tpu.pipeline_mode<synchronous>, transform_indices = @transform_10, window_bounds = array<i64: 1, 128>}, {pipeline_mode = #tpu.pipeline_mode<synchronous>, transform_indices = @transform_11, window_bounds = array<i64: 128, 128>}, {pipeline_mode = #tpu.pipeline_mode<synchronous>, transform_indices = @transform_12, window_bounds = array<i64: 1, 128>}, {transform_indices = @transform_13, window_bounds = array<i64: 16, 128>}]} {
    %c0 = arith.constant 0 : index
    %c0_0 = arith.constant 0 : index
    %0 = vector.load %arg1[%c0, %c0_0] : memref<16x32xf32, #tpu.memory_space<vmem>>, vector<16x32xf32>
    %c0_1 = arith.constant 0 : index
    %c0_2 = arith.constant 0 : index
    %1 = vector.load %arg2[%c0_1, %c0_2] : memref<32x128xf32, #tpu.memory_space<vmem>>, vector<32x128xf32>
    %cst = arith.constant dense<0.000000e+00> : vector<16x128xf32>
    %2 = tpu.matmul %0, %1, %cst {dimension_numbers = #tpu.dot_dimension_numbers<[1], [0], [0], [1], [0, 0, 1, 1], [], []>} : vector<16x32xf32>, vector<32x128xf32>, vector<16x128xf32> -> vector<16x128xf32>
    %c0_3 = arith.constant 0 : index
    %c0_4 = arith.constant 0 : index
    %3 = vector.load %arg3[%c0_3, %c0_4] : memref<1x128xf32, #tpu.memory_space<vmem>>, vector<1x128xf32>
    %4 = vector.broadcast %3 : vector<1x128xf32> to vector<16x128xf32>
    %5 = arith.addf %2, %4 : vector<16x128xf32>
    %cst_5 = arith.constant 0.000000e+00 : f32
    %6 = vector.broadcast %cst_5 : f32 to vector<16x128xf32>
    %7 = arith.maximumf %5, %6 : vector<16x128xf32>
    %c0_6 = arith.constant 0 : index
    %c0_7 = arith.constant 0 : index
    %8 = vector.load %arg4[%c0_6, %c0_7] : memref<128x128xf32, #tpu.memory_space<vmem>>, vector<128x128xf32>
    %cst_8 = arith.constant dense<0.000000e+00> : vector<16x128xf32>
    %9 = tpu.matmul %7, %8, %cst_8 {dimension_numbers = #tpu.dot_dimension_numbers<[1], [0], [0], [1], [0, 0, 1, 1], [], []>} : vector<16x128xf32>, vector<128x128xf32>, vector<16x128xf32> -> vector<16x128xf32>
    %c0_9 = arith.constant 0 : index
    %c0_10 = arith.constant 0 : index
    %10 = vector.load %arg5[%c0_9, %c0_10] : memref<1x128xf32, #tpu.memory_space<vmem>>, vector<1x128xf32>
    %11 = vector.broadcast %10 : vector<1x128xf32> to vector<16x128xf32>
    %12 = arith.addf %9, %11 : vector<16x128xf32>
    %13 = arith.negf %12 : vector<16x128xf32>
    %14 = math.exp %13 : vector<16x128xf32>
    %cst_11 = arith.constant 1.000000e+00 : f32
    %15 = vector.broadcast %cst_11 : f32 to vector<16x128xf32>
    %16 = arith.addf %15, %14 : vector<16x128xf32>
    %17 = arith.divf %15, %16 : vector<16x128xf32>
    %18 = tpu.iota {dimensions = array<i32: 1>} : vector<16x128xi32>
    %c32_i32 = arith.constant 32 : i32
    %19 = vector.broadcast %c32_i32 : i32 to vector<16x128xi32>
    %20 = arith.cmpi slt, %18, %19 : vector<16x128xi32>
    %cst_12 = arith.constant 0.000000e+00 : f32
    %21 = vector.broadcast %cst_12 : f32 to vector<16x128xf32>
    %22 = arith.select %20, %17, %21 : vector<16x128xi1>, vector<16x128xf32>
    %23 = vector.extract_strided_slice %22 {offsets = [0, 0], sizes = [16, 32], strides = [1, 1]} : vector<16x128xf32> to vector<16x32xf32>
    %24 = arith.mulf %0, %23 : vector<16x32xf32>
    %c0_13 = arith.constant 0 : index
    %c0_14 = arith.constant 0 : index
    %25 = vector.load %arg6[%c0_13, %c0_14] : memref<32x256xf32, #tpu.memory_space<vmem>>, vector<32x256xf32>
    %cst_15 = arith.constant dense<0.000000e+00> : vector<16x256xf32>
    %26 = tpu.matmul %24, %25, %cst_15 {dimension_numbers = #tpu.dot_dimension_numbers<[1], [0], [0], [1], [0, 0, 1, 1], [], []>} : vector<16x32xf32>, vector<32x256xf32>, vector<16x256xf32> -> vector<16x256xf32>
    %c0_16 = arith.constant 0 : index
    %c0_17 = arith.constant 0 : index
    %27 = vector.load %arg7[%c0_16, %c0_17] : memref<1x256xf32, #tpu.memory_space<vmem>>, vector<1x256xf32>
    %28 = vector.broadcast %27 : vector<1x256xf32> to vector<16x256xf32>
    %29 = arith.addf %26, %28 : vector<16x256xf32>
    %cst_18 = arith.constant 0.000000e+00 : f32
    %30 = vector.broadcast %cst_18 : f32 to vector<16x256xf32>
    %31 = arith.maximumf %29, %30 : vector<16x256xf32>
    %c0_19 = arith.constant 0 : index
    %c0_20 = arith.constant 0 : index
    %32 = vector.load %arg8[%c0_19, %c0_20] : memref<256x128xf32, #tpu.memory_space<vmem>>, vector<256x128xf32>
    %cst_21 = arith.constant dense<0.000000e+00> : vector<16x128xf32>
    %33 = tpu.matmul %31, %32, %cst_21 {dimension_numbers = #tpu.dot_dimension_numbers<[1], [0], [0], [1], [0, 0, 1, 1], [], []>} : vector<16x256xf32>, vector<256x128xf32>, vector<16x128xf32> -> vector<16x128xf32>
    %c0_22 = arith.constant 0 : index
    %c0_23 = arith.constant 0 : index
    %34 = vector.load %arg9[%c0_22, %c0_23] : memref<1x128xf32, #tpu.memory_space<vmem>>, vector<1x128xf32>
    %35 = vector.broadcast %34 : vector<1x128xf32> to vector<16x128xf32>
    %36 = arith.addf %33, %35 : vector<16x128xf32>
    %cst_24 = arith.constant 0.000000e+00 : f32
    %37 = vector.broadcast %cst_24 : f32 to vector<16x128xf32>
    %38 = arith.maximumf %36, %37 : vector<16x128xf32>
    %c0_25 = arith.constant 0 : index
    %c0_26 = arith.constant 0 : index
    %39 = vector.load %arg10[%c0_25, %c0_26] : memref<128x128xf32, #tpu.memory_space<vmem>>, vector<128x128xf32>
    %cst_27 = arith.constant dense<0.000000e+00> : vector<16x128xf32>
    %40 = tpu.matmul %38, %39, %cst_27 {dimension_numbers = #tpu.dot_dimension_numbers<[1], [0], [0], [1], [0, 0, 1, 1], [], []>} : vector<16x128xf32>, vector<128x128xf32>, vector<16x128xf32> -> vector<16x128xf32>
    %c0_28 = arith.constant 0 : index
    %c0_29 = arith.constant 0 : index
    %41 = vector.load %arg11[%c0_28, %c0_29] : memref<1x128xf32, #tpu.memory_space<vmem>>, vector<1x128xf32>
    %42 = vector.broadcast %41 : vector<1x128xf32> to vector<16x128xf32>
    %43 = arith.addf %40, %42 : vector<16x128xf32>
    %cst_30 = arith.constant 0.000000e+00 : f32
    %44 = vector.broadcast %cst_30 : f32 to vector<16x128xf32>
    %45 = arith.maximumf %43, %44 : vector<16x128xf32>
    %c0_31 = arith.constant 0 : index
    %c0_32 = arith.constant 0 : index
    %46 = vector.load %arg12[%c0_31, %c0_32] : memref<128x128xf32, #tpu.memory_space<vmem>>, vector<128x128xf32>
    %cst_33 = arith.constant dense<0.000000e+00> : vector<16x128xf32>
    %47 = tpu.matmul %45, %46, %cst_33 {dimension_numbers = #tpu.dot_dimension_numbers<[1], [0], [0], [1], [0, 0, 1, 1], [], []>} : vector<16x128xf32>, vector<128x128xf32>, vector<16x128xf32> -> vector<16x128xf32>
    %c0_34 = arith.constant 0 : index
    %c0_35 = arith.constant 0 : index
    %48 = vector.load %arg13[%c0_34, %c0_35] : memref<1x128xf32, #tpu.memory_space<vmem>>, vector<1x128xf32>
    %49 = vector.broadcast %48 : vector<1x128xf32> to vector<16x128xf32>
    %50 = arith.addf %47, %49 : vector<16x128xf32>
    %51 = arith.addf %22, %50 : vector<16x128xf32>
    %c0_36 = arith.constant 0 : index
    %c0_37 = arith.constant 0 : index
    %52 = vector.load %arg14[%c0_36, %c0_37] : memref<16x128xf32, #tpu.memory_space<vmem>>, vector<16x128xf32>
    tpu.vector_store %arg14[%c0_36, %c0_37], %51 {strides = array<i32>} : memref<16x128xf32, #tpu.memory_space<vmem>>, vector<16x128xf32>,
    return
  }
  func.func @transform_0(%arg0: i32) -> (i32, i32) {
    %c0_i32 = arith.constant 0 : i32
    %c0_i32_0 = arith.constant 0 : i32
    return %arg0, %c0_i32 : i32, i32
  }
  func.func @transform_1(%arg0: i32) -> (i32, i32) {
    %c0_i32 = arith.constant 0 : i32
    %c0_i32_0 = arith.constant 0 : i32
    %c0_i32_1 = arith.constant 0 : i32
    return %c0_i32, %c0_i32_0 : i32, i32
  }
  func.func @transform_2(%arg0: i32) -> (i32, i32) {
    %c0_i32 = arith.constant 0 : i32
    %c0_i32_0 = arith.constant 0 : i32
    %c0_i32_1 = arith.constant 0 : i32
    return %c0_i32, %c0_i32_0 : i32, i32
  }
  func.func @transform_3(%arg0: i32) -> (i32, i32) {
    %c0_i32 = arith.constant 0 : i32
    %c0_i32_0 = arith.constant 0 : i32
    %c0_i32_1 = arith.constant 0 : i32
    return %c0_i32, %c0_i32_0 : i32, i32
  }
  func.func @transform_4(%arg0: i32) -> (i32, i32) {
    %c0_i32 = arith.constant 0 : i32
    %c0_i32_0 = arith.constant 0 : i32
    %c0_i32_1 = arith.constant 0 : i32
    return %c0_i32, %c0_i32_0 : i32, i32
  }
  func.func @transform_5(%arg0: i32) -> (i32, i32) {
    %c0_i32 = arith.constant 0 : i32
    %c0_i32_0 = arith.constant 0 : i32
    %c0_i32_1 = arith.constant 0 : i32
    return %c0_i32, %c0_i32_0 : i32, i32
  }
  func.func @transform_6(%arg0: i32) -> (i32, i32) {
    %c0_i32 = arith.constant 0 : i32
    %c0_i32_0 = arith.constant 0 : i32
    %c0_i32_1 = arith.constant 0 : i32
    return %c0_i32, %c0_i32_0 : i32, i32
  }
  func.func @transform_7(%arg0: i32) -> (i32, i32) {
    %c0_i32 = arith.constant 0 : i32
    %c0_i32_0 = arith.constant 0 : i32
    %c0_i32_1 = arith.constant 0 : i32
    return %c0_i32, %c0_i32_0 : i32, i32
  }
  func.func @transform_8(%arg0: i32) -> (i32, i32) {
    %c0_i32 = arith.constant 0 : i32
    %c0_i32_0 = arith.constant 0 : i32
    %c0_i32_1 = arith.constant 0 : i32
    return %c0_i32, %c0_i32_0 : i32, i32
  }
  func.func @transform_9(%arg0: i32) -> (i32, i32) {
    %c0_i32 = arith.constant 0 : i32
    %c0_i32_0 = arith.constant 0 : i32
    %c0_i32_1 = arith.constant 0 : i32
    return %c0_i32, %c0_i32_0 : i32, i32
  }
  func.func @transform_10(%arg0: i32) -> (i32, i32) {
    %c0_i32 = arith.constant 0 : i32
    %c0_i32_0 = arith.constant 0 : i32
    %c0_i32_1 = arith.constant 0 : i32
    return %c0_i32, %c0_i32_0 : i32, i32
  }
  func.func @transform_11(%arg0: i32) -> (i32, i32) {
    %c0_i32 = arith.constant 0 : i32
    %c0_i32_0 = arith.constant 0 : i32
    %c0_i32_1 = arith.constant 0 : i32
    return %c0_i32, %c0_i32_0 : i32, i32
  }
  func.func @transform_12(%arg0: i32) -> (i32, i32) {
    %c0_i32 = arith.constant 0 : i32
    %c0_i32_0 = arith.constant 0 : i32
    %c0_i32_1 = arith.constant 0 : i32
    return %c0_i32, %c0_i32_0 : i32, i32
  }
  func.func @transform_13(%arg0: i32) -> (i32, i32) {
    %c0_i32 = arith.constant 0 : i32
    %c0_i32_0 = arith.constant 0 : i32
    return %arg0, %c0_i32 : i32, i32
  }
}

</mosaic_0001>

<bundles_post_ra>
// kernel: feature_selection_nn.1
= control target key start
LH: loop header
LB: loop body
LE: loop exit
PB: predicated region body
PF: predicated region fallthrough
CT: control target
= control target key end

     0   :  { %s1615_s25 = smov 0   ;;  %s1955_s0 = inlined_call_operand.vmem [shape: f32[32,32], index: 0, kind: input, shape index: {}]   ;;  %s1956_s1 = inlined_call_operand.vmem [shape: f32[32,128], index: 1, kind: input, shape index: {}]   ;;  %s1957_s2 = inlined_call_operand.vmem [shape: f32[1,128], index: 2, kind: input, shape index: {}]   ;;  %s1958_s3 = inlined_call_operand.vmem [shape: f32[128,128], index: 3, kind: input, shape index: {}]   ;;  %s1959_s4 = inlined_call_operand.vmem [shape: f32[1,128], index: 4, kind: input, shape index: {}]   ;;  %s1960_s5 = inlined_call_operand.vmem [shape: f32[32,256], index: 5, kind: input, shape index: {}]   ;;  %s1961_s6 = inlined_call_operand.vmem [shape: f32[1,256], index: 6, kind: input, shape index: {}]   ;;  %s1962_s7 = inlined_call_operand.vmem [shape: f32[256,128], index: 7, kind: input, shape index: {}]   ;;  %s1963_s8 = inlined_call_operand.vmem [shape: f32[1,128], index: 8, kind: input, shape index: {}]   ;;  %s1964_s9 = inlined_call_operand.vmem [shape: f32[128,128], index: 9, kind: input, shape index: {}]   ;;  %s1965_s10 = inlined_call_operand.vmem [shape: f32[1,128], index: 10, kind: input, shape index: {}]   ;;  %s1966_s11 = inlined_call_operand.vmem [shape: f32[128,128], index: 11, kind: input, shape index: {}]   ;;  %s1967_s12 = inlined_call_operand.vmem [shape: f32[1,128], index: 12, kind: input, shape index: {}]   ;;  %s1968_s13 = inlined_call_operand.vmem [shape: f32[32,128], index: 13, kind: output, shape index: {}]  }
   0x1 LB: > { %s1139_s26 = sadd.s32 4294967295, %s1542_s25   ;;  %p1143_p0 = scmp.ge.s32.totalorder %s1542_s25, 1  ;;  %s1542_s25 = sphi %s1615_s25, %s23_s25  }
   0x2   : > { %p388_p1 = scmp.lt.s32.totalorder %s1542_s25, 3 }
   0x4   : > { %p389_p2 = pnand %p1143_p0, %p388_p1 }
   0x5   : > { %v446_v0 = vld [vmem:[%s1956_s1] sm:$0xff] (!%p389_p2)  ;;  %v447_v1 = vld [vmem:[%s1956_s1 + $0x8] sm:$0xff] (!%p389_p2)  ;;  %v448_v2 = vld [vmem:[%s1956_s1 + $0x10] sm:$0xff] (!%p389_p2)  ;;  %s1144_s16 = sshll.u32 (!%p389_p2), %s1139_s26, 1  ;;  %vm457_vm0 = vcmask (!%p389_p2), 261120   ;;  %v1544_v46 = vmov (!%p389_p2), 0.0  }
   0x6   : > { %392 = sbr.rel (%p389_p2) target bundleno = 1357 (0x54d), region = 72  ;;  %v1375_v3 = vpack.c.bf16 (!%p389_p2), %v447_v1, %v446_v0  ;;  %v449_v4 = vld [vmem:[%s1956_s1 + $0x18] sm:$0xff] (!%p389_p2)  ;;  %p433_p3 = scmp.lt.s32.totalorder (!%p389_p2), %s1144_s16, 3  ;;  %v541_v6 = vld [vmem:[%s1958_s3] sm:$0xff] (!%p389_p2)  ;;  %v542_v7 = vld [vmem:[%s1958_s3 + $0x8] sm:$0xff] (!%p389_p2)  ;;  %748 = vmatprep.mubr.f32.mxu0 (!%p389_p2), %v1544_v46 }
   0x7   : > { %v1379_v5 = vpack.c.bf16 (!%p389_p2), %v449_v4, %v448_v2  ;;  %v1383_v8 = vpack.c.bf16 (!%p389_p2), %v542_v7, %v541_v6  ;;  %v543_v9 = vld [vmem:[%s1958_s3 + $0x10] sm:$0xff] (!%p389_p2)  ;;  %v544_v10 = vld [vmem:[%s1958_s3 + $0x18] sm:$0xff] (!%p389_p2)  ;;  %v545_v14 = vld [vmem:[%s1958_s3 + $0x20] sm:$0xff] (!%p389_p2)  ;;  %v651_v2 = vlaneseq (!%p389_p2) }
   0x8   : > { %1376 = vmatprep.subr.bf16.mxu1 (!%p389_p2), %v1375_v3  ;;  %v1387_v13 = vpack.c.bf16 (!%p389_p2), %v544_v10, %v543_v9  ;;  %v546_v15 = vld [vmem:[%s1958_s3 + $0x28] sm:$0xff] (!%p389_p2)  ;;  %v547_v17 = vld [vmem:[%s1958_s3 + $0x30] sm:$0xff] (!%p389_p2)  ;;  %v548_v18 = vld [vmem:[%s1958_s3 + $0x38] sm:$0xff] (!%p389_p2) }
   0x9   : > { %1378 = vmatpush3.bf16.msra.mxu1 (!%p389_p2), %v1375_v3  ;;  %v1391_v16 = vpack.c.bf16 (!%p389_p2), %v546_v15, %v545_v14  ;;  %v1395_v19 = vpack.c.bf16 (!%p389_p2), %v548_v18, %v547_v17  ;;  %v549_v20 = vld [vmem:[%s1958_s3 + $0x40] sm:$0xff] (!%p389_p2)  ;;  %v550_v21 = vld [vmem:[%s1958_s3 + $0x48] sm:$0xff] (!%p389_p2)  ;;  %v551_v23 = vld [vmem:[%s1958_s3 + $0x50] sm:$0xff] (!%p389_p2)  ;;  %v652_v3 = vand.u32 (!%p389_p2), 127, %v651_v2 }
   0xa   : > { %1380 = vmatprep.subr.bf16.mxu1 (!%p389_p2), %v1379_v5  ;;  %v1399_v22 = vpack.c.bf16 (!%p389_p2), %v550_v21, %v549_v20  ;;  %v552_v24 = vld [vmem:[%s1958_s3 + $0x58] sm:$0xff] (!%p389_p2)  ;;  %v553_v26 = vld [vmem:[%s1958_s3 + $0x60] sm:$0xff] (!%p389_p2)  ;;  %v554_v27 = vld [vmem:[%s1958_s3 + $0x68] sm:$0xff] (!%p389_p2) }
   0xb   : > { %v1403_v25 = vpack.c.bf16 (!%p389_p2), %v552_v24, %v551_v23  ;;  %v1407_v28 = vpack.c.bf16 (!%p389_p2), %v554_v27, %v553_v26  ;;  %v555_v29 = vld [vmem:[%s1958_s3 + $0x70] sm:$0xff] (!%p389_p2)  ;;  %v556_v30 = vld [vmem:[%s1958_s3 + $0x78] sm:$0xff] (!%p389_p2)  ;;  %v1148_v32 = vld [vmem:[%s1957_s2] ss:$0 sm:$0xff] (!%p389_p2)  ;;  %vm653_vm1 = vcmp.lt.s32.totalorder (!%p389_p2), %v652_v3, 32 }
   0xc   : > { %v1411_v31 = vpack.c.bf16 (!%p389_p2), %v556_v30, %v555_v29  ;;  %v659_v39 = vld [vmem:[%s1960_s5 + $0x8] sm:$0xff] (!%p389_p2)  ;;  %v661_v40 = vld [vmem:[%s1960_s5 + $0x18] sm:$0xff] (!%p389_p2)  ;;  %v658_v41 = vld [vmem:[%s1960_s5] sm:$0xff] (!%p389_p2) }
   0xd   : > { %s1970_s16 = smov (!%p433_p3, %s1144_s16), 3  ;;  %1382 = vmatpush3.bf16.msra.mxu1 %v1379_v5  ;;  %v1415_v42 = vpack.c.bf16 %v661_v40, %v659_v39  ;;  %v660_v43 = vld [vmem:[%s1960_s5 + $0x10] sm:$0xff]  ;;  %v663_v44 = vld [vmem:[%s1960_s5 + $0x28] sm:$0xff]  ;;  %v665_v45 = vld [vmem:[%s1960_s5 + $0x38] sm:$0xff] }
   0xe   : > { %s1145_s23 = sshll.u32 %s1970_s16, 3  ;;  %1384 = vmatprep.subr.bf16.mxu1 %v1383_v8  ;;  %v1417_v47 = vpack.c.bf16 %v660_v43, %v658_v41  ;;  %v1419_v48 = vpack.c.bf16 %v665_v45, %v663_v44  ;;  %v662_v49 = vld [vmem:[%s1960_s5 + $0x20] sm:$0xff]  ;;  %v664_v50 = vld [vmem:[%s1960_s5 + $0x30] sm:$0xff]  ;;  %v782_v53 = vld [vmem:[%s1962_s7 + $0x88] sm:$0xff] }
   0xf   : > { %s436_s27 = scalar_lea.vmem %s1955_s0, %s1145_s23  ;;  %1416 = vmatprep.subr.bf16.mxu0 %v1415_v42  ;;  %v1421_v51 = vpack.c.bf16 %v664_v50, %v662_v49  ;;  %v781_v52 = vld [vmem:[%s1962_s7 + $0x80] sm:$0xff]  ;;  %v766_v5 = vld [vmem:[%s1962_s7 + $0x8] sm:$0xff]  ;;  %v783_v7 = vld [vmem:[%s1962_s7 + $0x90] sm:$0xff]  ;;  %s442_s15 = scalar_lea.vmem %s1968_s13, %s1145_s23 }
  0x10   : > { %v1655_v11 = vld [vmem:[%s436_s27] sm:$0xff]  ;;  %v1657_v12 = vld [vmem:[%s436_s27 + $0x8] sm:$0xff]  ;;  %1418 = vmatpush1.bf16.msra.mxu0 %v1417_v47  ;;  %v1423_v54 = vpack.c.bf16 %v782_v53, %v781_v52  ;;  %v768_v17 = vld [vmem:[%s1962_s7 + $0x18] sm:$0xff] }
  0x11   : > { %1267 = vmatprep.mubr.msk.f32.mxu1 %vm457_vm0, %v1655_v11  ;;  %1420 = vmatprep.subr.bf16.mxu0 %v1419_v48  ;;  %v1151_v55 = vld [vmem:[%s1959_s4] ss:$0 sm:$0xff]  ;;  %v786_v20 = vld [vmem:[%s1962_s7 + $0xa8] sm:$0xff]  ;;  %v788_v26 = vld [vmem:[%s1962_s7 + $0xb8] sm:$0xff] }
  0x12   : > { %1268 = vmatmul.mubr.msk.f32.vlgmr.msra.gmra.mrb[0].mxu1 %vm457_vm0, %v1657_v12  ;;  %v765_v4 = vld [vmem:[%s1962_s7] sm:$0xff]  ;;  %v770_v24 = vld [vmem:[%s1962_s7 + $0x28] sm:$0xff]  ;;  %v772_v29 = vld [vmem:[%s1962_s7 + $0x38] sm:$0xff] }
  0x13   : > { %1386 = vmatpush3.bf16.msra.mxu1 %v1383_v8  ;;  %v784_v8 = vld [vmem:[%s1962_s7 + $0x98] sm:$0xff]  ;;  %v769_v23 = vld [vmem:[%s1962_s7 + $0x20] sm:$0xff]  ;;  %v775_v40 = vld [vmem:[%s1962_s7 + $0x50] sm:$0xff] }
  0x14   : > { %1388 = vmatprep.subr.bf16.mxu1 %v1387_v13  ;;  %1422 = vmatpush1.bf16.msra.mxu0 %v1421_v51  ;;  %v1427_v15 = vpack.c.bf16 %v784_v8, %v783_v7  ;;  %v789_v30 = vld [vmem:[%s1962_s7 + $0xc0] sm:$0xff]  ;;  %v776_v41 = vld [vmem:[%s1962_s7 + $0x58] sm:$0xff]  ;;  %v794_v43 = vld [vmem:[%s1962_s7 + $0xe8] sm:$0xff]  ;;  %v669_v7 = vshrl.u32 %v651_v2, 7 }
  0x15   : > { %1424 = vmatprep.subr.bf16.mxu0 %v1423_v54  ;;  %v793_v42 = vld [vmem:[%s1962_s7 + $0xe0] sm:$0xff]  ;;  %v1445_v44 = vpack.c.bf16 %v776_v41, %v775_v40  ;;  %v778_v47 = vld [vmem:[%s1962_s7 + $0x68] sm:$0xff]  ;;  %v795_v49 = vld [vmem:[%s1962_s7 + $0xf0] sm:$0xff] }
  0x16   : > { %v1447_v45 = vpack.c.bf16 %v794_v43, %v793_v42  ;;  %v796_v50 = vld [vmem:[%s1962_s7 + $0xf8] sm:$0xff]  ;;  %v779_v52 = vld [vmem:[%s1962_s7 + $0x70] sm:$0xff]  ;;  %v670_v8 = vsub.s32 0, %v669_v7  ;;  %v985_v41 = vld [vmem:[%s1966_s11 + $0x20] sm:$0xff] }
  0x17   : > { %1390 = vmatpush3.bf16.msra.mxu1 %v1387_v13  ;;  %v1425_v13 = vpack.c.bf16 %v766_v5, %v765_v4  ;;  %v1451_v51 = vpack.c.bf16 %v796_v50, %v795_v49  ;;  %v780_v53 = vld [vmem:[%s1962_s7 + $0x78] sm:$0xff]  ;;  %v889_v4 = vld [vmem:[%s1964_s9 + $0x40] sm:$0xff]  ;;  %v890_v5 = vld [vmem:[%s1964_s9 + $0x48] sm:$0xff] }
  0x18   : > { %1392 = vmatprep.subr.bf16.mxu1 %v1391_v16  ;;  %v1453_v54 = vpack.c.bf16 %v780_v53, %v779_v52  ;;  %v986_v42 = vld [vmem:[%s1966_s11 + $0x28] sm:$0xff]  ;;  %v991_v50 = vld [vmem:[%s1966_s11 + $0x50] sm:$0xff]  ;;  %v993_v53 = vld [vmem:[%s1966_s11 + $0x60] sm:$0xff] }
  0x19   : > { %v1495_v43 = vpack.c.bf16 %v986_v42, %v985_v41 }
  0x1b   : > { %1394 = vmatpush3.bf16.msra.mxu1 %v1391_v16  ;;  %v767_v16 = vld [vmem:[%s1962_s7 + $0x10] sm:$0xff] }
  0x1c   : > { %1396 = vmatprep.subr.bf16.mxu1 %v1395_v19 }
  0x1f   : > { %1398 = vmatpush3.bf16.msra.mxu1 %v1395_v19  ;;  %v785_v19 = vld [vmem:[%s1962_s7 + $0xa0] sm:$0xff] }
  0x20   : > { %1400 = vmatprep.subr.bf16.mxu1 %v1399_v22 }
  0x23   : > { %1402 = vmatpush3.bf16.msra.mxu1 %v1399_v22  ;;  %v1431_v22 = vpack.c.bf16 %v786_v20, %v785_v19 }
  0x24   : > { %1404 = vmatprep.subr.bf16.mxu1 %v1403_v25 }
  0x27   : > { %1406 = vmatpush3.bf16.msra.mxu1 %v1403_v25  ;;  %v787_v25 = vld [vmem:[%s1962_s7 + $0xb0] sm:$0xff] }
  0x28   : > { %1408 = vmatprep.subr.bf16.mxu1 %v1407_v28  ;;  %v1435_v27 = vpack.c.bf16 %v788_v26, %v787_v25 }
  0x2b   : > { %1410 = vmatpush3.bf16.msra.mxu1 %v1407_v28  ;;  %v771_v28 = vld [vmem:[%s1962_s7 + $0x30] sm:$0xff] }
  0x2c   : > { %1412 = vmatprep.subr.bf16.mxu1 %v1411_v31 }
  0x2f   : > { %1414 = vmatpush3.bf16.msra.mxu1 %v1411_v31  ;;  %v790_v31 = vld [vmem:[%s1962_s7 + $0xc8] sm:$0xff] }
  0xe5   : > { %v1269_v33 = vpop.f32.mrb[0].mxu1 }
  0xe6   : > { %v536_v34 = vadd.f32 %v1269_v33, %v1148_v32  ;;  %v530_v35 = vpop.f32.mrb[1].mxu1  ;;  %v1439_v33 = vpack.c.bf16 %v790_v31, %v789_v30  ;;  %v894_v30 = vld [vmem:[%s1964_s9 + $0x68] sm:$0xff] }
  0xe7   : > { %v531_v36 = vadd.f32 %v1148_v32, %v530_v35  ;;  %v1437_v32 = vpack.c.bf16 %v772_v29, %v771_v28  ;;  %v774_v35 = vld [vmem:[%s1962_s7 + $0x48] sm:$0xff]  ;;  %v893_v29 = vld [vmem:[%s1964_s9 + $0x60] sm:$0xff] }
  0xe8   : > { %v540_v38 = vmax.f32 %v536_v34, 0.0  ;;  %v773_v34 = vld [vmem:[%s1962_s7 + $0x40] sm:$0xff]  ;;  %v1479_v31 = vpack.c.bf16 %v894_v30, %v893_v29 }
  0xe9   : > { %v539_v37 = vmax.f32 %v531_v36, 0.0  ;;  %v791_v36 = vld [vmem:[%s1962_s7 + $0xd0] sm:$0xff] }
  0xeb   : > { %1302 = vmatprep.mubr.f32.mxu1 %v539_v37  ;;  %v792_v37 = vld [vmem:[%s1962_s7 + $0xd8] sm:$0xff] }
  0xec   : > { %1303 = vmatmul.mubr.f32.vlgmr.msra.gmra.mrb[2].mxu1 %v540_v38  ;;  %v1441_v38 = vpack.c.bf16 %v774_v35, %v773_v34  ;;  %v1443_v39 = vpack.c.bf16 %v792_v37, %v791_v36  ;;  %v981_v35 = vld [vmem:[%s1966_s11] sm:$0xff]  ;;  %v982_v36 = vld [vmem:[%s1966_s11 + $0x8] sm:$0xff]  ;;  %v983_v37 = vld [vmem:[%s1966_s11 + $0x10] sm:$0xff] }
 0x1bf   : > { %v1304_v56 = vpop.f32.mrb[2].mxu1 }
 0x1c0   : > { %v636_v57 = vadd.f32 %v1304_v56, %v1151_v55  ;;  %v630_v58 = vpop.f32.mrb[3].mxu1  ;;  %v882_v56 = vld [vmem:[%s1964_s9 + $0x8] sm:$0xff] }
 0x1c1   : > { %v631_v59 = vadd.f32 %v1151_v55, %v630_v58  ;;  %v881_v55 = vld [vmem:[%s1964_s9] sm:$0xff] }
 0x1c2   : > { %v1153_v60 = vmul.f32 -1.442695, %v636_v57  ;;  %v883_v57 = vld [vmem:[%s1964_s9 + $0x10] sm:$0xff]  ;;  %v1455_v58 = vpack.c.bf16 %v882_v56, %v881_v55 }
 0x1c3   : > { %v1152_v61 = vmul.f32 -1.442695, %v631_v59  ;;  %v884_v59 = vld [vmem:[%s1964_s9 + $0x18] sm:$0xff] }
 0x1c4   : > { %1528 = vpow2.f32 %v1153_v60  ;;  %v1459_v60 = vpack.c.bf16 %v884_v59, %v883_v57  ;;  %1456 = vmatprep.subr.bf16.mxu1 %v1455_v58  ;;  %v1156_v57 = vld [vmem:[%s1963_s8] ss:$0 sm:$0xff] }
 0x1c5   : > { %1530 = vpow2.f32 %v1152_v61  ;;  %v885_v61 = vld [vmem:[%s1964_s9 + $0x20] sm:$0xff]  ;;  %1458 = vmatpush3.bf16.msra.mxu1 %v1455_v58 }
 0x1c6   : > { %1460 = vmatprep.subr.bf16.mxu1 %v1459_v60 }
 0x1c9   : > { %1462 = vmatpush3.bf16.msra.mxu1 %v1459_v60 }
 0x1ce   : > { %v1529_v62 = vpop.eup %1528 }
 0x1cf   : > { %v1531_v63 = vpop.eup %1530  ;;  %v646_v0 = vadd.f32 1.0, %v1529_v62  ;;  %v886_v62 = vld [vmem:[%s1964_s9 + $0x28] sm:$0xff] }
 0x1d0   : > { %v645_v1 = vadd.f32 1.0, %v1531_v63  ;;  %v1463_v63 = vpack.c.bf16 %v886_v62, %v885_v61 }
 0x1d1   : > { %1532 = vrcp.f32 %v646_v0  ;;  %v887_v0 = vld [vmem:[%s1964_s9 + $0x30] sm:$0xff] }
 0x1d2   : > { %1534 = vrcp.f32 %v645_v1  ;;  %v888_v1 = vld [vmem:[%s1964_s9 + $0x38] sm:$0xff]  ;;  %1464 = vmatprep.subr.bf16.mxu1 %v1463_v63 }
 0x1d3   : > { %v1467_v3 = vpack.c.bf16 %v888_v1, %v887_v0  ;;  %1466 = vmatpush3.bf16.msra.mxu1 %v1463_v63 }
 0x1d5   : > { %1468 = vmatprep.subr.bf16.mxu1 %v1467_v3 }
 0x1d7   : > { %1470 = vmatpush3.bf16.msra.mxu1 %v1467_v3 }
 0x1db   : > { %v1533_v6 = vpop.eup %1532 }
 0x1dc   : > { %v1535_v9 = vpop.eup %1534  ;;  %v1758_v18 = vsel %vm653_vm1, %v1533_v6, 0.0  ;;  %v1471_v6 = vpack.c.bf16 %v890_v5, %v889_v4  ;;  %v995_v4 = vld [vmem:[%s1966_s11 + $0x70] sm:$0xff]  ;;  %v996_v5 = vld [vmem:[%s1966_s11 + $0x78] sm:$0xff] }
 0x1dd   : > { %v1748_v10 = vsel %vm653_vm1, %v1535_v9, 0.0  ;;  %v657_v21 = vmul.f32 %v1758_v18, %v1657_v12  ;;  %v1433_v12 = vpack.c.bf16 %v770_v24, %v769_v23  ;;  %v666_v9 = vld [vmem:[%s1961_s6] sm:$0x3] }
 0x1de   : > { %v656_v14 = vmul.f32 %v1748_v10, %v1655_v11  ;;  %v1429_v11 = vpack.c.bf16 %v768_v17, %v767_v16  ;;  %1472 = vmatprep.subr.bf16.mxu1 %v1471_v6 }
 0x1df   : > { %1474 = vmatpush3.bf16.msra.mxu1 %v1471_v6  ;;  %v1515_v6 = vpack.c.bf16 %v996_v5, %v995_v4 }
 0x1e0   : > { %1154 = vmatmul.mubr.msk.f32.vlgmr.msra.gmra.mrb[0].mxu0 %vm457_vm0, %v656_v14  ;;  %v671_v14 = vrot.slane %v666_v9, %v670_v8 }
 0x1e1   : > { %754 = vmatprep.mubr.f32.mxu0 %v1544_v46  ;;  %1426 = vmatpush3.bf16.msra.mxu0 %v1425_v13  ;;  %v777_v46 = vld [vmem:[%s1962_s7 + $0x60] sm:$0xff]  ;;  %v674_v13 = vsub.s32 1, %v669_v7 }
 0x1e2   : > { %1428 = vmatprep.subr.bf16.mxu0 %v1427_v15  ;;  %v1449_v48 = vpack.c.bf16 %v778_v47, %v777_v46  ;;  %v989_v47 = vld [vmem:[%s1966_s11 + $0x40] sm:$0xff] }
 0x1e3   : > { %v675_v15 = vrot.slane %v666_v9, %v674_v13  ;;  %v1157_v7 = vld [vmem:[%s1965_s10] ss:$0 sm:$0xff] }
 0x1e4   : > { %1155 = vmatmul.mubr.msk.f32.gmra.mrb[2].mxu0 %vm457_vm0, %v657_v21 }
 0x1e5   : > { %1430 = vmatpush3.bf16.msra.mxu0 %v1429_v11 }
 0x1e6   : > { %1432 = vmatprep.subr.bf16.mxu0 %v1431_v22 }
 0x1e9   : > { %1434 = vmatpush3.bf16.msra.mxu0 %v1433_v12  ;;  %v891_v12 = vld [vmem:[%s1964_s9 + $0x50] sm:$0xff] }
 0x1ea   : > { %1436 = vmatprep.subr.bf16.mxu0 %v1435_v27  ;;  %v892_v27 = vld [vmem:[%s1964_s9 + $0x58] sm:$0xff] }
 0x1eb   : > { %v1475_v28 = vpack.c.bf16 %v892_v27, %v891_v12 }
 0x1ed   : > { %1438 = vmatpush3.bf16.msra.mxu0 %v1437_v32  ;;  %1476 = vmatprep.subr.bf16.mxu1 %v1475_v28  ;;  %v895_v32 = vld [vmem:[%s1964_s9 + $0x70] sm:$0xff] }
 0x1ee   : > { %1440 = vmatprep.subr.bf16.mxu0 %v1439_v33  ;;  %1478 = vmatpush3.bf16.msra.mxu1 %v1475_v28  ;;  %v896_v33 = vld [vmem:[%s1964_s9 + $0x78] sm:$0xff] }
 0x1ef   : > { %1480 = vmatprep.subr.bf16.mxu1 %v1479_v31  ;;  %v1483_v34 = vpack.c.bf16 %v896_v33, %v895_v32 }
 0x1f1   : > { %1442 = vmatpush3.bf16.msra.mxu0 %v1441_v38  ;;  %v1487_v38 = vpack.c.bf16 %v982_v36, %v981_v35 }
 0x1f2   : > { %1444 = vmatprep.subr.bf16.mxu0 %v1443_v39  ;;  %1482 = vmatpush3.bf16.msra.mxu1 %v1479_v31  ;;  %v984_v39 = vld [vmem:[%s1966_s11 + $0x18] sm:$0xff] }
 0x1f3   : > { %1484 = vmatprep.subr.bf16.mxu1 %v1483_v34  ;;  %v1491_v40 = vpack.c.bf16 %v984_v39, %v983_v37 }
 0x1f5   : > { %1446 = vmatpush3.bf16.msra.mxu0 %v1445_v44  ;;  %v987_v44 = vld [vmem:[%s1966_s11 + $0x30] sm:$0xff] }
 0x1f6   : > { %1448 = vmatprep.subr.bf16.mxu0 %v1447_v45  ;;  %1486 = vmatpush3.bf16.msra.mxu1 %v1483_v34  ;;  %v988_v45 = vld [vmem:[%s1966_s11 + $0x38] sm:$0xff] }
 0x1f7   : > { %v1499_v46 = vpack.c.bf16 %v988_v45, %v987_v44 }
 0x1f9   : > { %1450 = vmatpush3.bf16.msra.mxu0 %v1449_v48  ;;  %v990_v48 = vld [vmem:[%s1966_s11 + $0x48] sm:$0xff] }
 0x1fa   : > { %1452 = vmatprep.subr.bf16.mxu0 %v1451_v51  ;;  %v1503_v49 = vpack.c.bf16 %v990_v48, %v989_v47  ;;  %v992_v51 = vld [vmem:[%s1966_s11 + $0x58] sm:$0xff] }
 0x1fb   : > { %v1507_v52 = vpack.c.bf16 %v992_v51, %v991_v50 }
 0x1fd   : > { %1454 = vmatpush3.bf16.msra.mxu0 %v1453_v54  ;;  %v994_v54 = vld [vmem:[%s1966_s11 + $0x68] sm:$0xff] }
 0x1fe   : > { %1488 = vmatprep.subr.bf16.mxu0 %v1487_v38  ;;  %v1511_v55 = vpack.c.bf16 %v994_v54, %v993_v53 }
 0x2b3   : > { %v750_v16 = vpop.f32.mrb[0].mxu0 }
 0x2b4   : > { %v751_v17 = vadd.f32 %v750_v16, %v671_v14  ;;  %v752_v19 = vpop.f32.mrb[1].mxu0 }
 0x2b5   : > { %v753_v20 = vadd.f32 %v752_v19, %v675_v15 }
 0x2b6   : > { %v761_v22 = vmax.f32 %v751_v17, 0.0  ;;  %v1158_v17 = vld [vmem:[%s1967_s12] ss:$0 sm:$0xff] }
 0x2b7   : > { %v762_v11 = vmax.f32 %v753_v20, 0.0  ;;  %v756_v21 = vpop.f32.mrb[2].mxu0 }
 0x2b8   : > { %v757_v23 = vadd.f32 %v756_v21, %v671_v14  ;;  %v758_v24 = vpop.f32.mrb[3].mxu0 }
 0x2b9   : > { %v759_v25 = vadd.f32 %v758_v24, %v675_v15  ;;  %868 = vmatprep.mubr.f32.mxu0 %v762_v11 }
 0x2ba   : > { %869 = vmatmul.mubr.f32.vlgmr.msra.gmra.mrb[4].mxu0 %v761_v22  ;;  %v763_v26 = vmax.f32 %v757_v23, 0.0 }
 0x2bb   : > { %v764_v2 = vmax.f32 %v759_v25, 0.0  ;;  %1490 = vmatpush3.bf16.msra.mxu0 %v1487_v38 }
 0x2bc   : > { %1492 = vmatprep.subr.bf16.mxu0 %v1491_v40 }
 0x2bd   : > { %873 = vmatprep.mubr.f32.mxu0 %v764_v2 }
 0x2be   : > { %874 = vmatmul.mubr.f32.gmra.mrb[6].mxu0 %v763_v26 }
 0x2bf   : > { %1494 = vmatpush3.bf16.msra.mxu0 %v1491_v40 }
 0x2c0   : > { %1496 = vmatprep.subr.bf16.mxu0 %v1495_v43 }
 0x2c3   : > { %1498 = vmatpush3.bf16.msra.mxu0 %v1495_v43 }
 0x2c4   : > { %1500 = vmatprep.subr.bf16.mxu0 %v1499_v46 }
 0x2c7   : > { %1502 = vmatpush3.bf16.msra.mxu0 %v1499_v46 }
 0x2c8   : > { %1504 = vmatprep.subr.bf16.mxu0 %v1503_v49 }
 0x2cb   : > { %1506 = vmatpush3.bf16.msra.mxu0 %v1503_v49 }
 0x2cc   : > { %1508 = vmatprep.subr.bf16.mxu0 %v1507_v52 }
 0x2cf   : > { %1510 = vmatpush3.bf16.msra.mxu0 %v1507_v52 }
 0x2d0   : > { %1512 = vmatprep.subr.bf16.mxu0 %v1511_v55 }
 0x2d3   : > { %1514 = vmatpush3.bf16.msra.mxu0 %v1511_v55 }
 0x2d4   : > { %1516 = vmatprep.subr.bf16.mxu0 %v1515_v6 }
 0x2d7   : > { %1518 = vmatpush3.bf16.msra.mxu0 %v1515_v6 }
 0x38d   : > { %v1217_v56 = vpop.f32.mrb[4].mxu0 }
 0x38e   : > { %v1218_v58 = vpop.f32.mrb[5].mxu0 }
 0x38f   : > { %v1219_v59 = vadd.f32 %v1218_v58, %v1217_v56 }
 0x391   : > { %v871_v60 = vadd.f32 %v1219_v59, %v1156_v57  ;;  %v1220_v61 = vpop.f32.mrb[6].mxu0 }
 0x392   : > { %v1221_v62 = vpop.f32.mrb[7].mxu0 }
 0x393   : > { %v879_v63 = vmax.f32 %v871_v60, 0.0  ;;  %v1222_v0 = vadd.f32 %v1221_v62, %v1220_v61 }
 0x395   : > { %v876_v1 = vadd.f32 %v1222_v0, %v1156_v57  ;;  %1337 = vmatprep.mubr.f32.mxu1 %v879_v63 }
 0x397   : > { %v880_v3 = vmax.f32 %v876_v1, 0.0 }
 0x399   : > { %1338 = vmatmul.mubr.f32.vlgmr.msra.gmra.mrb[4].mxu1 %v880_v3 }
 0x46c   : > { %v1339_v8 = vpop.f32.mrb[4].mxu1 }
 0x46d   : > { %v976_v9 = vadd.f32 %v1339_v8, %v1157_v7  ;;  %v970_v13 = vpop.f32.mrb[5].mxu1 }
 0x46e   : > { %v971_v14 = vadd.f32 %v1157_v7, %v970_v13 }
 0x46f   : > { %v980_v16 = vmax.f32 %v976_v9, 0.0 }
 0x470   : > { %v979_v15 = vmax.f32 %v971_v14, 0.0 }
 0x472   : > { %1372 = vmatprep.mubr.f32.mxu0 %v979_v15 }
 0x473   : > { %1373 = vmatmul.mubr.f32.vlgmr.msra.gmra.mrb[8].mxu0 %v980_v16 }
 0x546   : > { %v1374_v19 = vpop.f32.mrb[8].mxu0 }
 0x547   : > { %v1076_v20 = vadd.f32 %v1374_v19, %v1158_v17  ;;  %v1070_v11 = vpop.f32.mrb[9].mxu0 }
 0x548   : > { %v1071_v21 = vadd.f32 %v1158_v17, %v1070_v11 }
 0x549   : > { %v1080_v23 = vadd.f32 %v1076_v20, %v1758_v18 }
 0x54a   : > { %v1079_v22 = vadd.f32 %v1071_v21, %v1748_v10 }
 0x54b   : > { %1082 = vst [vmem:[%s442_s15 + $0x8] sm:$0xff] %v1080_v23 }
 0x54c   : > { %1081 = vst [vmem:[%s442_s15] sm:$0xff] %v1079_v22 }
 0x54d PF: > { %s23_s25 = sadd.s32 1, %s1542_s25  }
 0x54e   : > { %p20_p4 = scmp.ge.s32.totalorder %s23_s25, 4  }
 0x550   :  { %22 = sbr.rel (!%p20_p4) target bundleno = 1 (0x1), region = 102 }

</bundles_post_ra>
